<compile_context>
chip_gen: v7x
topology: tpu7x:2x2x1
jax: 0.10.0
libtpu: 0.0.40
codegen_flags: <defaults>
</compile_context>

<pallas_src>
import functools

import jax
import jax.numpy as jnp
import numpy as np
from jax.experimental import pallas as pl
from jax.experimental.pallas import tpu as pltpu

_LANE = 128
_DEFAULT_BLOCK_BUDGET = 16 * 1024 * 1024   # bytes for all double-buffered blocks
_VMEM_LIMIT_BYTES = 32 * 1024 * 1024       # raise v5e's 16 MiB default, fits v7x


def _round_up(x, m):
    return ((x + m - 1) // m) * m


# --------------- single-pass kernel: full (padded) K resident ----------------

def _binquant_kernel(w_ref, o_ref, *, true_k):
    w = jnp.clip(w_ref[...], -1.0, 1.0)
    # Per-row mean of |w| over the TRUE K (zero-padded lanes contribute 0).
    alpha = jnp.sum(jnp.abs(w), axis=-1, keepdims=True,
                    dtype=jnp.float32) / float(true_k)
    sgn = jnp.where(w >= 0, 1.0, -1.0).astype(jnp.float32)   # sign(0) -> +1
    o_ref[...] = (sgn * alpha).astype(o_ref.dtype)


# --------------- two-pass kernels: K tiled for very large rows ---------------

def _alpha_kernel(w_ref, alpha_ref, *, true_k):
    @pl.when(pl.program_id(1) == 0)
    def _():
        alpha_ref[...] = jnp.zeros_like(alpha_ref)

    w = jnp.clip(w_ref[...], -1.0, 1.0)
    alpha_ref[...] += jnp.sum(jnp.abs(w), axis=-1, keepdims=True,
                              dtype=jnp.float32)

    @pl.when(pl.program_id(1) == pl.num_programs(1) - 1)
    def _():
        alpha_ref[...] = alpha_ref[...] / float(true_k)


def _scale_kernel(w_ref, alpha_ref, o_ref):
    w = jnp.clip(w_ref[...], -1.0, 1.0)
    sgn = jnp.where(w >= 0, 1.0, -1.0).astype(jnp.float32)
    o_ref[...] = (sgn * alpha_ref[...]).astype(o_ref.dtype)


# ------------------------------ wrapper --------------------------------------

def binary_weight_quantizer(weight, *, block_budget_bytes=_DEFAULT_BLOCK_BUDGET):
    """Forward of Binary_weight_quantizer (W=2, alpha=True, w_clamp=True)."""
    w_shape = weight.shape
    assert len(w_shape) in (2, 4), f"unexpected weight shape {w_shape}"
    O = w_shape[0]
    K = int(np.prod(w_shape[1:]))
    itemsize = jnp.dtype(weight.dtype).itemsize
    row_mult = 16 if itemsize < 4 else 8       # bf16 packs (16,128) per vreg

    w2 = weight.reshape(O, K)
    K_pad = _round_up(K, _LANE)                # lane-dense -> unmasked stores
    O_ceil = _round_up(O, row_mult)

    # Largest row tile (multiple of row_mult) whose double-buffered
    # (input + output) blocks fit in the byte budget.
    rows_in_budget = block_budget_bytes // (4 * K_pad * itemsize)
    tile_o = (rows_in_budget // row_mult) * row_mult

    if tile_o >= row_mult:
        # -------- single pass: whole padded K resident per row tile --------
        if tile_o >= O_ceil:
            if O_ceil >= 2 * row_mult:
                # Keep >= 2 grid steps so both TensorCores (v7x) get work.
                tile_o = _round_up((O_ceil + 1) // 2, row_mult)
            else:
                tile_o = O_ceil
        O_pad = _round_up(O, tile_o)
        if (O_pad, K_pad) != (O, K):
            w2 = jnp.pad(w2, ((0, O_pad - O), (0, K_pad - K)))
        grid = (O_pad // tile_o,)

        out2 = pl.pallas_call(
            functools.partial(_binquant_kernel, true_k=K),
            out_shape=jax.ShapeDtypeStruct((O_pad, K_pad), weight.dtype),
            grid_spec=pltpu.PrefetchScalarGridSpec(
                num_scalar_prefetch=0,
                grid=grid,
                in_specs=[pl.BlockSpec((tile_o, K_pad), lambda i: (i, 0))],
                out_specs=pl.BlockSpec((tile_o, K_pad), lambda i: (i, 0)),
            ),
            compiler_params=pltpu.CompilerParams(
                dimension_semantics=("parallel",),
                vmem_limit_bytes=_VMEM_LIMIT_BYTES,
            ),
        )(w2)
    else:
        # -------- two-pass path: rows too long to keep resident --------
        tile_o = _round_up(min(O, 256), row_mult)
        tile_k = (block_budget_bytes // (4 * tile_o * itemsize) // _LANE) * _LANE
        tile_k = max(_LANE, tile_k)
        K_pad = _round_up(K, tile_k)
        O_pad = _round_up(O, tile_o)
        if (O_pad, K_pad) != (O, K):
            w2 = jnp.pad(w2, ((0, O_pad - O), (0, K_pad - K)))
        n_o = O_pad // tile_o
        n_k = K_pad // tile_k

        # Pass 1: per-row alpha = sum(|clamp(w)|)/K, reduced over the K axis.
        alpha = pl.pallas_call(
            functools.partial(_alpha_kernel, true_k=K),
            out_shape=jax.ShapeDtypeStruct((O_pad, 1), jnp.float32),
            grid_spec=pltpu.PrefetchScalarGridSpec(
                num_scalar_prefetch=0,
                grid=(n_o, n_k),
                in_specs=[pl.BlockSpec((tile_o, tile_k), lambda i, k: (i, k))],
                out_specs=pl.BlockSpec((tile_o, 1), lambda i, k: (i, 0)),
            ),
            compiler_params=pltpu.CompilerParams(
                dimension_semantics=("parallel", "arbitrary"),
                vmem_limit_bytes=_VMEM_LIMIT_BYTES,
            ),
        )(w2)

        # Pass 2: re-stream w and emit sign(w) * alpha.
        out2 = pl.pallas_call(
            _scale_kernel,
            out_shape=jax.ShapeDtypeStruct((O_pad, K_pad), weight.dtype),
            grid_spec=pltpu.PrefetchScalarGridSpec(
                num_scalar_prefetch=0,
                grid=(n_o, n_k),
                in_specs=[pl.BlockSpec((tile_o, tile_k), lambda i, k: (i, k)),
                          pl.BlockSpec((tile_o, 1), lambda i, k: (i, 0))],
                out_specs=pl.BlockSpec((tile_o, tile_k), lambda i, k: (i, k)),
            ),
            compiler_params=pltpu.CompilerParams(
                dimension_semantics=("parallel", "parallel"),
                vmem_limit_bytes=_VMEM_LIMIT_BYTES,
            ),
        )(w2, alpha)

    if out2.shape != (O, K):
        out2 = out2[:O, :K]
    return out2.reshape(w_shape)


# ------------------------------ reference ------------------------------------

def _reference(weight):
    w = jnp.clip(weight.astype(jnp.float32), -1.0, 1.0)
    O = weight.shape[0]
    alpha = jnp.mean(jnp.abs(w.reshape(O, -1)), axis=1)
    alpha = alpha.reshape((O,) + (1,) * (weight.ndim - 1))
    sgn = jnp.where(w >= 0.0, 1.0, -1.0)
    return (sgn * alpha).astype(weight.dtype)


if __name__ == "__main__":
    key = jax.random.PRNGKey(0)
    k1, k2, k3, k4 = jax.random.split(key, 4)

    # Conv-style weight (OIHW), linear-style weight, bf16 weight, and a
    # larger-K weight that exercises the two-pass path (budget forced small).
    w_conv = jax.random.normal(k1, (16, 4, 3, 3), dtype=jnp.float32) * 1.5
    w_lin = jax.random.normal(k2, (32, 64), dtype=jnp.float32) * 1.5
    w_bf16 = (jax.random.normal(k3, (24, 96), dtype=jnp.float32) * 1.5
              ).astype(jnp.bfloat16)
    w_bigk = jax.random.normal(k4, (40, 2048), dtype=jnp.float32) * 1.5

    out_conv = jax.block_until_ready(binary_weight_quantizer(w_conv))
    out_lin = jax.block_until_ready(binary_weight_quantizer(w_lin))
    out_bf16 = jax.block_until_ready(binary_weight_quantizer(w_bf16))
    out_bigk = jax.block_until_ready(
        binary_weight_quantizer(w_bigk, block_budget_bytes=64 * 1024))

    np.testing.assert_allclose(np.asarray(out_conv), np.asarray(_reference(w_conv)),
                               rtol=1e-6, atol=1e-6)
    np.testing.assert_allclose(np.asarray(out_lin), np.asarray(_reference(w_lin)),
                               rtol=1e-6, atol=1e-6)
    np.testing.assert_allclose(
        np.asarray(out_bf16.astype(jnp.float32)),
        np.asarray(_reference(w_bf16).astype(jnp.float32)),
        rtol=2e-2, atol=1e-2)
    np.testing.assert_allclose(np.asarray(out_bigk), np.asarray(_reference(w_bigk)),
                               rtol=1e-5, atol=1e-6)

    print("KERNEL_OK")
</pallas_src>

<mosaic_0001>
module attributes {stable_mosaic.version = 11 : i64} {
  func.func @_binquant_kernel(%arg0: i32, %arg1: memref<8x128xf32, #tpu.memory_space<vmem>>, %arg2: memref<8x128xf32, #tpu.memory_space<vmem>>) attributes {dimension_semantics = [#tpu.dimension_semantics<parallel>], iteration_bounds = array<i64: 2>, scalar_prefetch = 0 : i64, scratch_operands = 0 : i64, tpu.core_type = #tpu.core_type<tc>, window_params = [{transform_indices = @transform_0, window_bounds = array<i64: 8, 128>}, {transform_indices = @transform_1, window_bounds = array<i64: 8, 128>}]} {
    %c0 = arith.constant 0 : index
    %c0_0 = arith.constant 0 : index
    %0 = vector.load %arg1[%c0, %c0_0] : memref<8x128xf32, #tpu.memory_space<vmem>>, vector<8x128xf32>
    %cst = arith.constant -1.000000e+00 : f32
    %cst_1 = arith.constant 1.000000e+00 : f32
    %1 = vector.broadcast %cst : f32 to vector<8x128xf32>
    %2 = arith.maximumf %1, %0 : vector<8x128xf32>
    %3 = vector.broadcast %cst_1 : f32 to vector<8x128xf32>
    %4 = arith.minimumf %3, %2 : vector<8x128xf32>
    %5 = math.absf %4 : vector<8x128xf32>
    %cst_2 = arith.constant dense<0.000000e+00> : vector<8xf32>
    %6 = vector.multi_reduction <add>, %5, %cst_2 [1] : vector<8x128xf32> to vector<8xf32>
    %7 = vector.shape_cast %6 : vector<8xf32> to vector<8x1xf32>
    %cst_3 = arith.constant 3.600000e+01 : f32
    %8 = vector.broadcast %cst_3 : f32 to vector<8x1xf32>
    %9 = arith.divf %7, %8 : vector<8x1xf32>
    %cst_4 = arith.constant 0.000000e+00 : f32
    %10 = vector.broadcast %cst_4 : f32 to vector<8x128xf32>
    %11 = arith.cmpf oge, %4, %10 : vector<8x128xf32>
    %cst_5 = arith.constant 1.000000e+00 : f32
    %cst_6 = arith.constant -1.000000e+00 : f32
    %12 = vector.broadcast %cst_5 : f32 to vector<8x128xf32>
    %13 = vector.broadcast %cst_6 : f32 to vector<8x128xf32>
    %14 = arith.select %11, %12, %13 : vector<8x128xi1>, vector<8x128xf32>
    %15 = vector.broadcast %9 : vector<8x1xf32> to vector<8x128xf32>
    %16 = arith.mulf %14, %15 : vector<8x128xf32>
    %c0_7 = arith.constant 0 : index
    %c0_8 = arith.constant 0 : index
    %17 = vector.load %arg2[%c0_7, %c0_8] : memref<8x128xf32, #tpu.memory_space<vmem>>, vector<8x128xf32>
    tpu.vector_store %arg2[%c0_7, %c0_8], %16 {strides = array<i32>} : memref<8x128xf32, #tpu.memory_space<vmem>>, vector<8x128xf32>,
    return
  }
  func.func @transform_0(%arg0: i32) -> (i32, i32) {
    %c0_i32 = arith.constant 0 : i32
    %c0_i32_0 = arith.constant 0 : i32
    return %arg0, %c0_i32 : i32, i32
  }
  func.func @transform_1(%arg0: i32) -> (i32, i32) {
    %c0_i32 = arith.constant 0 : i32
    %c0_i32_0 = arith.constant 0 : i32
    return %arg0, %c0_i32 : i32, i32
  }
}

</mosaic_0001>

<bundles_post_ra>
// kernel: tpu_custom_call.1
= control target key start
LH: loop header
LB: loop body
LE: loop exit
PB: predicated region body
PF: predicated region fallthrough
CT: control target
= control target key end

     0   :  { %6 = vsyncpa [#allocation3], 0  ;;  %s560_s0 = inlined_call_operand.hbm [shape: f32[16,128], index: 0, kind: input, shape index: {}]   ;;  %s561_s1 = inlined_call_operand.hbm [shape: f32[16,128], index: 1, kind: output, shape index: {}]  }
   0x1   :  { %8 = vsyncpa [#allocation3 + $0x1], 0 }
   0x2   :  { %9 = vsyncpa [#allocation4], 0 }
   0x3   :  { %11 = vsyncpa [#allocation4 + $0x1], 0  ;;  %s399_s6 = smov 0   ;;  %s401_s7 = smov 0  }
   0x4   :  { %s403_s8 = smov 0   ;;  %s405_s9 = smov 0  }
   0x5 LB: > { %s420_s10 = sadd.s32 4294967295, %s384_s9   ;;  %s228_s11 = sadd.s32 4294967294, %s384_s9   ;;  %s384_s9 = sphi %s405_s9, %s576_s9   ;;  %s380_s8 = sphi %s403_s8, %s575_s8   ;;  %s376_s7 = sphi %s401_s7, %s574_s7   ;;  %s372_s6 = sphi %s399_s6, %s573_s6  }
   0x6   : > { %s424_s12 = sadd.s32 1, %s384_s9   ;;  %s24_s13 = sadd.s32 1, %s380_s8 }
   0x7   : > { %s21_s14 = ssub.s32 %s384_s9, %s424_s12  ;;  %p31_p0 = scmp.ne.s32.totalorder %s380_s8, %s376_s7 }
   0x8   : > { %p22_p1 = scmp.eq.s32.totalorder %s21_s14, 0  ;;  %p32_p2 = scmp.eq.s32.totalorder %s384_s9, 0 }
   0x9   : > { %p37_p3 = scmp.ne.s32.totalorder %s376_s7, %s372_s6  ;;  %p38_p4 = scmp.eq.s32.totalorder %s420_s10, 0 }
   0xa   : > { %s436_s15 = scalar_select %p22_p1, %s380_s8, %s24_s13  }
   0xb   : > { %p438_p5 = por %p32_p2, %p31_p0  ;;  %p442_p6 = por %p38_p4, %p37_p3 }
   0xc   : > { %p61_p7 = scmp.eq.s32.totalorder %s420_s10, 1  ;;  %p67_p8 = scmp.eq.s32.totalorder %s228_s11, 1 }
   0xd   : > { %p253_p10 = scmp.lt.s32.totalorder %s384_s9, 2  ;;  %s87_s20 = sand.u32 1, %s380_s8  }
   0xe   : > { %p449_p11 = por %p61_p7, %p31_p0  ;;  %p453_p12 = por %p67_p8, %p37_p3 }
   0xf   : > { %s232_s21 = sshll.u32 %s384_s9, 7  ;;  %s231_s22 = sshll.u32 %s87_s20, 3 }
  0x10   : > { %s565_s18 = scalar_select %p449_p11, 1, 0 }
  0x11   : > { %s566_s19 = scalar_select %p453_p12, 1, 0 }
  0x12   : > { %s462_s25 = scalar_lea.hbm %s560_s0, %s232_s21  ;;  %s91_s26 = scalar_lea.vmem [#allocation2], %s231_s22 }
  0x13   : > { %s98_s27 = sshll.u32 %s91_s26, 4  ;;  %p466_p13 = pnand %p253_p10, %p438_p5  ;;  %s470_s27 = int_to_ptr.vmem [resolvable:$true] %s98_s27 }
  0x14   : > { %s88_s29 = scalar_lea.sflag [#allocation3], %s87_s20  ;;  %s288_s30 = scalar_lea.hbm %s462_s25, 128 }
  0x15   : > { %p289_p2 = scmp.ne.s32.totalorder %s462_s25, %s288_s30  ;;  %p290_p3 = pneg %p466_p13 }
  0x16   : > { %s293_s4 = scalar_lea.hbm %s560_s0, 256  ;;  %p294_p5 = scmp.lt.u32.totalorder %s462_s25, %s560_s0 }
  0x17   : > { %p291_p4 = pnand %p290_p3, %p289_p2  ;;  %p295_p8 = scmp.lt.u32.totalorder %s293_s4, %s288_s30 }
  0x18   : > { %p297_p9 = scmp.lt.u32.totalorder %s288_s30, %s462_s25 }
  0x19   : > { %p292_p7 = pneg %p291_p4  ;;  %p296_p10 = por %p295_p8, %p294_p5 }
  0x1b   : > { %p298_p0 = por %p297_p9, %p296_p10 }
  0x1d   : > { %p299_p1 = pnand %p298_p0, %p292_p7 }
  0x1f   : > { %302 = shalt.err (!%p299_p1)
}
  0x20   : > { %s303_s13 = scalar_lea.vmem %s470_s27, 128  ;;  %s386_s14 = smov [#allocation2]  }
  0x21   : > { %p304_p2 = scmp.ne.s32.totalorder %s470_s27, %s303_s13  ;;  %s308_s16 = sshll.u32 %s386_s14, 4  ;;  %s309_s16 = int_to_ptr.vmem [resolvable:$false] %s308_s16 }
  0x22   : > { %s310_s20 = scalar_lea.vmem %s309_s16, 256  ;;  %p311_p11 = scmp.lt.s32.totalorder %s470_s27, %s309_s16 }
  0x23   : > { %p306_p4 = pnand %p304_p2, %p290_p3  ;;  %p312_p5 = scmp.lt.s32.totalorder %s310_s20, %s303_s13 }
  0x25   : > { %p307_p12 = pneg %p306_p4  ;;  %p313_p8 = por %p312_p5, %p311_p11 }
  0x27   : > { %p314_p9 = pnand %p313_p8, %p307_p12 }
  0x29   : > { %317 = shalt.err (!%p314_p9)
}
  0x2a   : > { %248 = dma.hbm_to_vmem [thread:$0]  (!%p466_p13), %s462_s25, 128, %s470_s27, %s88_s29  }
  0x2b   : > { %p568_p0 = scmp.lt.s32.totalorder %s384_s9, 3  ;;  %p569_p1 = scmp.ge.s32.totalorder %s384_s9, 1 }
  0x2d   : > { %p104_p3 = pnand %p569_p1, %p568_p0 }
  0x2e   : > { %s504_s21 = sand.u32 (!%p104_p3), 1, %s376_s7  }
  0x2f   : > { %107 = sbr.rel (%p104_p3) target bundleno = 220 (0xdc), region = 24  ;;  %s234_s22 = sshll.u32 (!%p104_p3), %s504_s21, 3 }
  0x30   : > { %s110_s23 = scalar_lea.sflag (!%p104_p3), [#allocation3], %s504_s21  ;;  %s113_s24 = scalar_lea.vmem (!%p104_p3), [#allocation2], %s234_s22 }
  0x36   : > { %363 = dma.done.wait (%p442_p6), %s110_s23, 128  }
  0x37   : > { %365 = vsyncadd (%p442_p6), %s110_s23, 4294967168  ;;  %v132_v0 = vld [vmem:[%s113_s24] sm:$0xff]  ;;  %v387_v4 = vmov -1.0   ;;  %s238_s25 = sshll.u32 %s420_s10, 7  ;;  %s131_s26 = scalar_lea.vmem [#allocation5], %s234_s22 }
  0x38   : > { %v236_v1 = vclamps-f32 %v132_v0, 1.0  ;;  %s158_s27 = sshll.u32 %s131_s26, 4  ;;  %s516_s17 = scalar_lea.hbm %s561_s1, %s238_s25  ;;  %s518_s27 = int_to_ptr.vmem [resolvable:$true] %s158_s27 }
  0x39   : > { %s145_s30 = scalar_lea.sflag [#allocation4], %s504_s21  ;;  %s318_s2 = scalar_lea.vmem %s518_s27, 128 }
  0x3a   : > { %v135_v2 = vand.u32 2147483647, %v236_v1  ;;  %vm140_vm0 = vcmp.ge.f32.partialorder %v236_v1, 0.0  ;;  %p319_p6 = scmp.ne.s32.totalorder %s518_s27, %s318_s2  ;;  %p570_p11 = scmp.ne.s32.totalorder %s565_s18, 0 }
  0x3b   : > { %v141_v5 = vsel %vm140_vm0, 1.0, %v387_v4  ;;  %s388_s10 = smov [#allocation5]  }
  0x3c   : > { %136 = vadd.xlane.f32.xlu0 %v135_v2  ;;  %p320_p12 = pnand %p319_p6, %p570_p11  ;;  %s322_s3 = sshll.u32 %s388_s10, 4  ;;  %s323_s3 = int_to_ptr.vmem [resolvable:$false] %s322_s3 }
  0x3d   : > { %s324_s4 = scalar_lea.vmem %s323_s3, 256  ;;  %p325_p7 = scmp.lt.s32.totalorder %s518_s27, %s323_s3 }
  0x3e   : > { %p321_p13 = pneg %p320_p12  ;;  %p326_p10 = scmp.lt.s32.totalorder %s324_s4, %s318_s2 }
  0x40   : > { %p327_p2 = por %p326_p10, %p325_p7 }
  0x42   : > { %p328_p4 = pnand %p327_p2, %p321_p13 }
  0xc9   : > { %v137_v3 = vpop.xlane.xlu0 %136 }
  0xca   : > { %v139_v6 = vmul.f32 0.027777778, %v137_v3 }
  0xcc   : > { %v142_v7 = vmul.f32 %v141_v5, %v139_v6 }
  0xce   : > { %143 = vst [vmem:[%s131_s26] sm:$0xff] %v142_v7 }
  0xcf   : > { %331 = shalt.err (!%p328_p4)
}
  0xd0   : > { %s332_s5 = scalar_lea.hbm %s516_s17, 128  ;;  %s336_s14 = scalar_lea.hbm %s561_s1, 256 }
  0xd1   : > { %p333_p5 = scmp.ne.s32.totalorder %s516_s17, %s332_s5  ;;  %p337_p0 = scmp.lt.u32.totalorder %s516_s17, %s561_s1 }
  0xd2   : > { %p338_p1 = scmp.lt.u32.totalorder %s336_s14, %s332_s5  ;;  %p340_p6 = scmp.lt.u32.totalorder %s332_s5, %s516_s17 }
  0xd3   : > { %p334_p8 = pnand %p333_p5, %p570_p11 }
  0xd4   : > { %p339_p3 = por %p338_p1, %p337_p0 }
  0xd5   : > { %p335_p9 = pneg %p334_p8 }
  0xd6   : > { %p341_p12 = por %p340_p6, %p339_p3 }
  0xd8   : > { %p342_p13 = pnand %p341_p12, %p335_p9 }
  0xda   : > { %345 = shalt.err (!%p342_p13)
}
  0xdb   : > { %243 = dma.vmem_to_hbm [thread:$0]  (%p570_p11), %s518_s27, 128, %s516_s17, %s145_s30  }
  0xdc PF: > { %s170_s21 = sand.u32 1, %s372_s6   ;;  %p571_p7 = scmp.ne.s32.totalorder %s566_s19, 0 }
  0xdd   : > { %p572_p10 = scmp.ge.s32.totalorder %s384_s9, 2  ;;  %s171_s22 = scalar_lea.sflag [#allocation4], %s170_s21 }
  0xdf   : > { %p250_p2 = pnand %p572_p10, %p571_p7 }
  0xe1   : > { %367 = dma.done.wait (!%p250_p2), %s171_s22, 128  }
  0xe2   : > { %369 = vsyncadd (!%p250_p2), %s171_s22, 4294967168  ;;  %p14_p4 = scmp.ge.s32.totalorder %s424_s12, 4   ;;  %s573_s6 = smov %s376_s7 }
  0xe3   : > { %s574_s7 = smov %s380_s8  ;;  %s575_s8 = smov %s436_s15 }
  0xe4   : > { %s576_s9 = smov %s424_s12  ;;  %16 = sbr.rel (!%p14_p4) target bundleno = 5 (0x5), region = 69 }
  0xeb   :  { %176 = vsyncpa [#allocation3], 1 }
  0xec   :  { %178 = vsyncpa [#allocation3 + $0x1], 1 }
  0xed   :  { %179 = vsyncpa [#allocation4], 1 }
  0xee   :  { %181 = vsyncpa [#allocation4 + $0x1], 1 }

</bundles_post_ra>
